<compile_context>
chip_gen: v7x
topology: tpu7x:2x2x1
jax: 0.10.0
libtpu: 0.0.40
codegen_flags: <defaults>
</compile_context>

<pallas_src>
import jax
import jax.numpy as jnp
from jax.experimental import pallas as pl
from jax.experimental.pallas import tpu as pltpu

LEAKY_SLOPE = 0.1
BN_EPS = 1e-5
PAD = 128                      # lane-dense width for hidden / action features
MATMUL_DTYPE = jnp.bfloat16    # MXU operand dtype (accumulation stays f32)

# Row indices of the packed (16, PAD) parameter table.
_V_BN0_G, _V_BN0_B = 0, 1
_V_B1, _V_BN1_G, _V_BN1_B = 2, 3, 4
_V_B2, _V_BN2_G, _V_BN2_B = 5, 6, 7
_V_B3, _V_BN3_G, _V_BN3_B = 8, 9, 10
_V_B4 = 11
_N_VEC_ROWS = 16               # pad the table to a full (8,128) multiple


def _round_up(n, m):
    return (n + m - 1) // m * m


def dqn_kernel(n_ref, x_ref, vec_ref, ws_ref, out_ref):
    # n_ref:  (1,)  int32 in SMEM  -- real (unpadded) batch size
    # x_ref:  (bp, state_dim) f32  -- rows >= n are zero padding
    # vec_ref:(16, PAD) f32        -- packed biases / BN gamma,beta
    # ws_ref: (4, PAD, PAD) bf16   -- packed (in,out) weights, zero-padded
    n = n_ref[0]
    inv_n = 1.0 / n.astype(jnp.float32)

    x = x_ref[...]                               # (bp, state_dim) f32
    vecs = vec_ref[...]                          # (16, PAD) f32
    bp, state_w = x.shape

    # One hoisted (bp, PAD) mask slab reused by bn1/bn2/bn3.
    row = jax.lax.broadcasted_iota(jnp.int32, (bp, 1), 0)
    maskf = jnp.broadcast_to((row < n).astype(jnp.float32), (bp, PAD))

    def row_vec(i):
        return vecs[i:i + 1, :]                  # static slice -> (1, PAD)

    def leaky_relu(h):
        return jnp.where(h > 0, h, LEAKY_SLOPE * h)

    def linear(h, w, b_row):
        # bf16 operands on the MXU, f32 accumulate; elementwise math stays f32
        # (v5e has no bf16 VPU/EUP path).
        return (jnp.dot(h.astype(MATMUL_DTYPE), w,
                        preferred_element_type=jnp.float32) + row_vec(b_row))

    def batch_norm_masked(h, g_row, b_row):
        # Fused single-pass batch stats over the real rows only.
        hm = h * maskf
        s1 = jnp.sum(hm, axis=0, keepdims=True)
        s2 = jnp.sum(hm * h, axis=0, keepdims=True)
        mean = s1 * inv_n
        var = jnp.maximum(s2 * inv_n - mean * mean, 0.0)   # biased variance
        inv_std = jax.lax.rsqrt(var + BN_EPS)
        return (h - mean) * inv_std * row_vec(g_row) + row_vec(b_row)

    # ---- input_bn (batch > 1 path) on the narrow 16-lane input -------------
    # Padded rows of x are exactly zero, so no mask is needed for the sums.
    s1 = jnp.sum(x, axis=0, keepdims=True)
    s2 = jnp.sum(x * x, axis=0, keepdims=True)
    mean0 = s1 * inv_n
    var0 = jnp.maximum(s2 * inv_n - mean0 * mean0, 0.0)
    g0 = vecs[_V_BN0_G:_V_BN0_G + 1, :state_w]
    b0 = vecs[_V_BN0_B:_V_BN0_B + 1, :state_w]
    h = (x - mean0) * jax.lax.rsqrt(var0 + BN_EPS) * g0 + b0     # (bp, 16)

    # ---- fc1 -> bn1 -> leaky_relu -> dropout --------------------------------
    w1 = ws_ref[0][:state_w, :]                  # (16, PAD) bf16 static slice
    h = leaky_relu(batch_norm_masked(linear(h, w1, _V_B1), _V_BN1_G, _V_BN1_B))
    # TODO(synk): nn.Dropout(0.2) training randomness is not reproducible across
    # frameworks; implemented as identity (eval semantics).

    # ---- fc2 -> bn2 -> leaky_relu -> dropout --------------------------------
    h = leaky_relu(batch_norm_masked(linear(h, ws_ref[1], _V_B2),
                                     _V_BN2_G, _V_BN2_B))

    # ---- fc3 -> bn3 -> leaky_relu -------------------------------------------
    h = leaky_relu(batch_norm_masked(linear(h, ws_ref[2], _V_B3),
                                     _V_BN3_G, _V_BN3_B))

    # ---- fc4 (Q-values): lane-dense (bp, PAD) slab; wrapper slices ----------
    out_ref[...] = linear(h, ws_ref[3], _V_B4)


def dqn_forward(x, params):
    """Pallas-backed forward pass. Assumes batch > 1 (BatchNorm-active path)."""
    b, state_dim = x.shape
    assert b > 1, "kernel implements the batch>1 (BatchNorm active) path"
    bp = _round_up(b, 8)
    # Row-pad only (zero rows are masked out of BN stats). No lane padding.
    if bp != b:
        xp = jnp.zeros((bp, state_dim), jnp.float32).at[:b].set(x)
    else:
        xp = x.astype(jnp.float32)
    n_arr = jnp.full((1,), b, jnp.int32)

    vmem = pl.BlockSpec(memory_space=pltpu.MemorySpace.VMEM)
    smem = pl.BlockSpec(memory_space=pltpu.MemorySpace.SMEM)
    # TODO(synk): for tens-of-thousands-row batches on v7x, switch to a
    # two-phase batch-tiled grid (partial BN sums, then normalize+matmul) to
    # use the second TensorCore; a single resident block is exact and fastest
    # at DQN/replay-sized batches.
    out = pl.pallas_call(
        dqn_kernel,
        out_shape=jax.ShapeDtypeStruct((bp, PAD), jnp.float32),
        in_specs=[smem, vmem, vmem, vmem],
        out_specs=vmem,
    )(n_arr, xp, params["vecs"], params["weights"])
    # TODO(synk): if the consumer can take the padded (bp, PAD) slab (e.g. a
    # masked argmax over the first action_dim lanes), fuse/drop this slice.
    return out[:b, :params["action_dim"]]


def init_params(key, state_dim, action_dim, hidden_dims=(128, 128, 64)):
    """Kaiming-normal(fan_in, relu) Linear weights, zero biases, BN gamma=1/beta=0.

    Returns (ref_params, kernel_params). kernel_params carries one packed
    (4,128,128) bf16 weight array (stored (in,out), zero-padded) plus the
    packed (16,128) f32 bias/BN table.
    """
    dims = [state_dim, *hidden_dims, action_dim]
    keys = jax.random.split(key, len(dims) - 1)

    ref = {}
    for i in range(len(dims) - 1):
        fan_in, fan_out = dims[i], dims[i + 1]
        std = (2.0 / fan_in) ** 0.5  # kaiming_normal_(mode='fan_in', nonlinearity='relu')
        w = std * jax.random.normal(keys[i], (fan_out, fan_in), jnp.float32)
        ref[f"w{i + 1}"] = w.T                         # (in, out) for lane-aligned dot
        ref[f"b{i + 1}"] = jnp.zeros((1, fan_out), jnp.float32)
    for i, d in enumerate(dims[:-1]):
        ref[f"bn{i}_g"] = jnp.ones((1, d), jnp.float32)
        ref[f"bn{i}_b"] = jnp.zeros((1, d), jnp.float32)

    # One packed (4, PAD, PAD) weight tensor; padding rows/cols are zero so
    # padded lanes stay exactly 0 through the whole network.
    weights = jnp.zeros((4, PAD, PAD), jnp.float32)
    for i in range(4):
        w = ref[f"w{i + 1}"]
        weights = weights.at[i, :w.shape[0], :w.shape[1]].set(w)
    weights = weights.astype(MATMUL_DTYPE)

    def pad_v(v):
        return jnp.zeros((1, PAD), jnp.float32).at[:, :v.shape[1]].set(v)

    vec_rows = [
        ref["bn0_g"], ref["bn0_b"],
        ref["b1"], ref["bn1_g"], ref["bn1_b"],
        ref["b2"], ref["bn2_g"], ref["bn2_b"],
        ref["b3"], ref["bn3_g"], ref["bn3_b"],
        ref["b4"],
    ]
    vecs = jnp.concatenate(
        [pad_v(v) for v in vec_rows]
        + [jnp.zeros((_N_VEC_ROWS - len(vec_rows), PAD), jnp.float32)],
        axis=0)

    kern = {"weights": weights, "vecs": vecs, "action_dim": action_dim}
    return ref, kern


def dqn_forward_ref(x, p):
    """Pure-JAX reference (same bf16 MXU operands, f32 everywhere else)."""
    def bn(h, g, b):
        mean = jnp.mean(h, axis=0, keepdims=True)
        var = jnp.mean((h - mean) ** 2, axis=0, keepdims=True)
        return (h - mean) * jax.lax.rsqrt(var + BN_EPS) * g + b

    def leaky(h):
        return jnp.where(h > 0, h, LEAKY_SLOPE * h)

    def linear(h, w, b):
        return jnp.dot(h.astype(MATMUL_DTYPE), w.astype(MATMUL_DTYPE),
                       preferred_element_type=jnp.float32) + b

    h = bn(x, p["bn0_g"], p["bn0_b"])
    h = leaky(bn(linear(h, p["w1"], p["b1"]), p["bn1_g"], p["bn1_b"]))
    h = leaky(bn(linear(h, p["w2"], p["b2"]), p["bn2_g"], p["bn2_b"]))
    h = leaky(bn(linear(h, p["w3"], p["b3"]), p["bn3_g"], p["bn3_b"]))
    return linear(h, p["w4"], p["b4"])


if __name__ == "__main__":
    BATCH = 2
    STATE_DIM = 16
    ACTION_DIM = 4
    HIDDEN_DIMS = (128, 128, 64)

    root = jax.random.PRNGKey(0)
    k_params, k_x = jax.random.split(root)
    ref_params, kern_params = init_params(k_params, STATE_DIM, ACTION_DIM, HIDDEN_DIMS)
    x = jax.random.normal(k_x, (BATCH, STATE_DIM), jnp.float32)

    q_kernel = dqn_forward(x, kern_params)
    jax.block_until_ready(q_kernel)

    q_ref = dqn_forward_ref(x, ref_params)
    assert q_kernel.shape == (BATCH, ACTION_DIM)
    assert jnp.allclose(q_kernel, q_ref, atol=1e-3, rtol=1e-3), "mismatch vs JAX reference"

    print("KERNEL_OK")
</pallas_src>

<mosaic_0001>
module attributes {stable_mosaic.version = 11 : i64} {
  func.func @dqn_kernel(%arg0: memref<1xi32, #tpu.memory_space<smem>>, %arg1: memref<8x16xf32, #tpu.memory_space<vmem>>, %arg2: memref<16x128xf32, #tpu.memory_space<vmem>>, %arg3: memref<4x128x128xbf16, #tpu.memory_space<vmem>>, %arg4: memref<8x128xf32, #tpu.memory_space<vmem>>) attributes {dimension_semantics = [], scalar_prefetch = 0 : i64, scratch_operands = 0 : i64, tpu.core_type = #tpu.core_type<tc>} {
    %c0 = arith.constant 0 : index
    %0 = memref.load %arg0[%c0] : memref<1xi32, #tpu.memory_space<smem>>
    %1 = arith.sitofp %0 : i32 to f32
    %cst = arith.constant 1.000000e+00 : f32
    %2 = arith.divf %cst, %1 : f32
    %c0_0 = arith.constant 0 : index
    %c0_1 = arith.constant 0 : index
    %3 = vector.load %arg1[%c0_0, %c0_1] : memref<8x16xf32, #tpu.memory_space<vmem>>, vector<8x16xf32>
    %c0_2 = arith.constant 0 : index
    %c0_3 = arith.constant 0 : index
    %4 = vector.load %arg2[%c0_2, %c0_3] : memref<16x128xf32, #tpu.memory_space<vmem>>, vector<16x128xf32>
    %5 = tpu.iota {dimensions = array<i32: 0>} : vector<8x1xi32>
    %6 = vector.broadcast %0 : i32 to vector<8x1xi32>
    %7 = arith.cmpi slt, %5, %6 : vector<8x1xi32>
    %8 = arith.extui %7 : vector<8x1xi1> to vector<8x1xi32>
    %9 = arith.sitofp %8 : vector<8x1xi32> to vector<8x1xf32>
    %10 = vector.shape_cast %9 : vector<8x1xf32> to vector<8x1xf32>
    %11 = vector.broadcast %10 : vector<8x1xf32> to vector<8x128xf32>
    %cst_4 = arith.constant dense<0.000000e+00> : vector<16xf32>
    %12 = vector.multi_reduction <add>, %3, %cst_4 [0] : vector<8x16xf32> to vector<16xf32>
    %13 = vector.shape_cast %12 : vector<16xf32> to vector<1x16xf32>
    %14 = arith.mulf %3, %3 : vector<8x16xf32>
    %cst_5 = arith.constant dense<0.000000e+00> : vector<16xf32>
    %15 = vector.multi_reduction <add>, %14, %cst_5 [0] : vector<8x16xf32> to vector<16xf32>
    %16 = vector.shape_cast %15 : vector<16xf32> to vector<1x16xf32>
    %17 = vector.broadcast %2 : f32 to vector<1x16xf32>
    %18 = arith.mulf %13, %17 : vector<1x16xf32>
    %19 = vector.broadcast %2 : f32 to vector<1x16xf32>
    %20 = arith.mulf %16, %19 : vector<1x16xf32>
    %21 = arith.mulf %18, %18 : vector<1x16xf32>
    %22 = arith.subf %20, %21 : vector<1x16xf32>
    %cst_6 = arith.constant 0.000000e+00 : f32
    %23 = vector.broadcast %cst_6 : f32 to vector<1x16xf32>
    %24 = arith.maximumf %22, %23 : vector<1x16xf32>
    %25 = vector.extract_strided_slice %4 {offsets = [0, 0], sizes = [1, 16], strides = [1, 1]} : vector<16x128xf32> to vector<1x16xf32>
    %26 = vector.extract_strided_slice %4 {offsets = [1, 0], sizes = [1, 16], strides = [1, 1]} : vector<16x128xf32> to vector<1x16xf32>
    %27 = vector.broadcast %18 : vector<1x16xf32> to vector<8x16xf32>
    %28 = arith.subf %3, %27 : vector<8x16xf32>
    %cst_7 = arith.constant 9.99999974E-6 : f32
    %29 = vector.broadcast %cst_7 : f32 to vector<1x16xf32>
    %30 = arith.addf %24, %29 : vector<1x16xf32>
    %31 = math.rsqrt %30 : vector<1x16xf32>
    %32 = vector.broadcast %31 : vector<1x16xf32> to vector<8x16xf32>
    %33 = arith.mulf %28, %32 : vector<8x16xf32>
    %34 = vector.broadcast %25 : vector<1x16xf32> to vector<8x16xf32>
    %35 = arith.mulf %33, %34 : vector<8x16xf32>
    %36 = vector.broadcast %26 : vector<1x16xf32> to vector<8x16xf32>
    %37 = arith.addf %35, %36 : vector<8x16xf32>
    %c0_8 = arith.constant 0 : index
    %c0_9 = arith.constant 0 : index
    %c0_10 = arith.constant 0 : index
    %38 = vector.load %arg3[%c0_8, %c0_9, %c0_10] : memref<4x128x128xbf16, #tpu.memory_space<vmem>>, vector<1x128x128xbf16>
    %39 = vector.shape_cast %38 : vector<1x128x128xbf16> to vector<128x128xbf16>
    %40 = vector.extract_strided_slice %39 {offsets = [0, 0], sizes = [16, 128], strides = [1, 1]} : vector<128x128xbf16> to vector<16x128xbf16>
    %41 = arith.truncf %37 : vector<8x16xf32> to vector<8x16xbf16>
    %cst_11 = arith.constant dense<0.000000e+00> : vector<8x128xf32>
    %42 = tpu.matmul %41, %40, %cst_11 {dimension_numbers = #tpu.dot_dimension_numbers<[1], [0], [0], [1], [0, 0, 1, 1], [], []>} : vector<8x16xbf16>, vector<16x128xbf16>, vector<8x128xf32> -> vector<8x128xf32>
    %43 = vector.extract_strided_slice %4 {offsets = [2, 0], sizes = [1, 128], strides = [1, 1]} : vector<16x128xf32> to vector<1x128xf32>
    %44 = vector.broadcast %43 : vector<1x128xf32> to vector<8x128xf32>
    %45 = arith.addf %42, %44 : vector<8x128xf32>
    %46 = arith.mulf %45, %11 : vector<8x128xf32>
    %cst_12 = arith.constant dense<0.000000e+00> : vector<128xf32>
    %47 = vector.multi_reduction <add>, %46, %cst_12 [0] : vector<8x128xf32> to vector<128xf32>
    %48 = vector.shape_cast %47 : vector<128xf32> to vector<1x128xf32>
    %49 = arith.mulf %46, %45 : vector<8x128xf32>
    %cst_13 = arith.constant dense<0.000000e+00> : vector<128xf32>
    %50 = vector.multi_reduction <add>, %49, %cst_13 [0] : vector<8x128xf32> to vector<128xf32>
    %51 = vector.shape_cast %50 : vector<128xf32> to vector<1x128xf32>
    %52 = vector.broadcast %2 : f32 to vector<1x128xf32>
    %53 = arith.mulf %48, %52 : vector<1x128xf32>
    %54 = vector.broadcast %2 : f32 to vector<1x128xf32>
    %55 = arith.mulf %51, %54 : vector<1x128xf32>
    %56 = arith.mulf %53, %53 : vector<1x128xf32>
    %57 = arith.subf %55, %56 : vector<1x128xf32>
    %cst_14 = arith.constant 0.000000e+00 : f32
    %58 = vector.broadcast %cst_14 : f32 to vector<1x128xf32>
    %59 = arith.maximumf %57, %58 : vector<1x128xf32>
    %cst_15 = arith.constant 9.99999974E-6 : f32
    %60 = vector.broadcast %cst_15 : f32 to vector<1x128xf32>
    %61 = arith.addf %59, %60 : vector<1x128xf32>
    %62 = math.rsqrt %61 : vector<1x128xf32>
    %63 = vector.broadcast %53 : vector<1x128xf32> to vector<8x128xf32>
    %64 = arith.subf %45, %63 : vector<8x128xf32>
    %65 = vector.broadcast %62 : vector<1x128xf32> to vector<8x128xf32>
    %66 = arith.mulf %64, %65 : vector<8x128xf32>
    %67 = vector.extract_strided_slice %4 {offsets = [3, 0], sizes = [1, 128], strides = [1, 1]} : vector<16x128xf32> to vector<1x128xf32>
    %68 = vector.broadcast %67 : vector<1x128xf32> to vector<8x128xf32>
    %69 = arith.mulf %66, %68 : vector<8x128xf32>
    %70 = vector.extract_strided_slice %4 {offsets = [4, 0], sizes = [1, 128], strides = [1, 1]} : vector<16x128xf32> to vector<1x128xf32>
    %71 = vector.broadcast %70 : vector<1x128xf32> to vector<8x128xf32>
    %72 = arith.addf %69, %71 : vector<8x128xf32>
    %cst_16 = arith.constant 0.000000e+00 : f32
    %73 = vector.broadcast %cst_16 : f32 to vector<8x128xf32>
    %74 = arith.cmpf ogt, %72, %73 : vector<8x128xf32>
    %cst_17 = arith.constant 1.000000e-01 : f32
    %75 = vector.broadcast %cst_17 : f32 to vector<8x128xf32>
    %76 = arith.mulf %75, %72 : vector<8x128xf32>
    %77 = arith.select %74, %72, %76 : vector<8x128xi1>, vector<8x128xf32>
    %c1 = arith.constant 1 : index
    %c0_18 = arith.constant 0 : index
    %c0_19 = arith.constant 0 : index
    %78 = vector.load %arg3[%c1, %c0_18, %c0_19] : memref<4x128x128xbf16, #tpu.memory_space<vmem>>, vector<1x128x128xbf16>
    %79 = vector.shape_cast %78 : vector<1x128x128xbf16> to vector<128x128xbf16>
    %80 = arith.truncf %77 : vector<8x128xf32> to vector<8x128xbf16>
    %cst_20 = arith.constant dense<0.000000e+00> : vector<8x128xf32>
    %81 = tpu.matmul %80, %79, %cst_20 {dimension_numbers = #tpu.dot_dimension_numbers<[1], [0], [0], [1], [0, 0, 1, 1], [], []>} : vector<8x128xbf16>, vector<128x128xbf16>, vector<8x128xf32> -> vector<8x128xf32>
    %82 = vector.extract_strided_slice %4 {offsets = [5, 0], sizes = [1, 128], strides = [1, 1]} : vector<16x128xf32> to vector<1x128xf32>
    %83 = vector.broadcast %82 : vector<1x128xf32> to vector<8x128xf32>
    %84 = arith.addf %81, %83 : vector<8x128xf32>
    %85 = arith.mulf %84, %11 : vector<8x128xf32>
    %cst_21 = arith.constant dense<0.000000e+00> : vector<128xf32>
    %86 = vector.multi_reduction <add>, %85, %cst_21 [0] : vector<8x128xf32> to vector<128xf32>
    %87 = vector.shape_cast %86 : vector<128xf32> to vector<1x128xf32>
    %88 = arith.mulf %85, %84 : vector<8x128xf32>
    %cst_22 = arith.constant dense<0.000000e+00> : vector<128xf32>
    %89 = vector.multi_reduction <add>, %88, %cst_22 [0] : vector<8x128xf32> to vector<128xf32>
    %90 = vector.shape_cast %89 : vector<128xf32> to vector<1x128xf32>
    %91 = vector.broadcast %2 : f32 to vector<1x128xf32>
    %92 = arith.mulf %87, %91 : vector<1x128xf32>
    %93 = vector.broadcast %2 : f32 to vector<1x128xf32>
    %94 = arith.mulf %90, %93 : vector<1x128xf32>
    %95 = arith.mulf %92, %92 : vector<1x128xf32>
    %96 = arith.subf %94, %95 : vector<1x128xf32>
    %cst_23 = arith.constant 0.000000e+00 : f32
    %97 = vector.broadcast %cst_23 : f32 to vector<1x128xf32>
    %98 = arith.maximumf %96, %97 : vector<1x128xf32>
    %cst_24 = arith.constant 9.99999974E-6 : f32
    %99 = vector.broadcast %cst_24 : f32 to vector<1x128xf32>
    %100 = arith.addf %98, %99 : vector<1x128xf32>
    %101 = math.rsqrt %100 : vector<1x128xf32>
    %102 = vector.broadcast %92 : vector<1x128xf32> to vector<8x128xf32>
    %103 = arith.subf %84, %102 : vector<8x128xf32>
    %104 = vector.broadcast %101 : vector<1x128xf32> to vector<8x128xf32>
    %105 = arith.mulf %103, %104 : vector<8x128xf32>
    %106 = vector.extract_strided_slice %4 {offsets = [6, 0], sizes = [1, 128], strides = [1, 1]} : vector<16x128xf32> to vector<1x128xf32>
    %107 = vector.broadcast %106 : vector<1x128xf32> to vector<8x128xf32>
    %108 = arith.mulf %105, %107 : vector<8x128xf32>
    %109 = vector.extract_strided_slice %4 {offsets = [7, 0], sizes = [1, 128], strides = [1, 1]} : vector<16x128xf32> to vector<1x128xf32>
    %110 = vector.broadcast %109 : vector<1x128xf32> to vector<8x128xf32>
    %111 = arith.addf %108, %110 : vector<8x128xf32>
    %cst_25 = arith.constant 0.000000e+00 : f32
    %112 = vector.broadcast %cst_25 : f32 to vector<8x128xf32>
    %113 = arith.cmpf ogt, %111, %112 : vector<8x128xf32>
    %cst_26 = arith.constant 1.000000e-01 : f32
    %114 = vector.broadcast %cst_26 : f32 to vector<8x128xf32>
    %115 = arith.mulf %114, %111 : vector<8x128xf32>
    %116 = arith.select %113, %111, %115 : vector<8x128xi1>, vector<8x128xf32>
    %c2 = arith.constant 2 : index
    %c0_27 = arith.constant 0 : index
    %c0_28 = arith.constant 0 : index
    %117 = vector.load %arg3[%c2, %c0_27, %c0_28] : memref<4x128x128xbf16, #tpu.memory_space<vmem>>, vector<1x128x128xbf16>
    %118 = vector.shape_cast %117 : vector<1x128x128xbf16> to vector<128x128xbf16>
    %119 = arith.truncf %116 : vector<8x128xf32> to vector<8x128xbf16>
    %cst_29 = arith.constant dense<0.000000e+00> : vector<8x128xf32>
    %120 = tpu.matmul %119, %118, %cst_29 {dimension_numbers = #tpu.dot_dimension_numbers<[1], [0], [0], [1], [0, 0, 1, 1], [], []>} : vector<8x128xbf16>, vector<128x128xbf16>, vector<8x128xf32> -> vector<8x128xf32>
    %121 = vector.extract_strided_slice %4 {offsets = [8, 0], sizes = [1, 128], strides = [1, 1]} : vector<16x128xf32> to vector<1x128xf32>
    %122 = vector.broadcast %121 : vector<1x128xf32> to vector<8x128xf32>
    %123 = arith.addf %120, %122 : vector<8x128xf32>
    %124 = arith.mulf %123, %11 : vector<8x128xf32>
    %cst_30 = arith.constant dense<0.000000e+00> : vector<128xf32>
    %125 = vector.multi_reduction <add>, %124, %cst_30 [0] : vector<8x128xf32> to vector<128xf32>
    %126 = vector.shape_cast %125 : vector<128xf32> to vector<1x128xf32>
    %127 = arith.mulf %124, %123 : vector<8x128xf32>
    %cst_31 = arith.constant dense<0.000000e+00> : vector<128xf32>
    %128 = vector.multi_reduction <add>, %127, %cst_31 [0] : vector<8x128xf32> to vector<128xf32>
    %129 = vector.shape_cast %128 : vector<128xf32> to vector<1x128xf32>
    %130 = vector.broadcast %2 : f32 to vector<1x128xf32>
    %131 = arith.mulf %126, %130 : vector<1x128xf32>
    %132 = vector.broadcast %2 : f32 to vector<1x128xf32>
    %133 = arith.mulf %129, %132 : vector<1x128xf32>
    %134 = arith.mulf %131, %131 : vector<1x128xf32>
    %135 = arith.subf %133, %134 : vector<1x128xf32>
    %cst_32 = arith.constant 0.000000e+00 : f32
    %136 = vector.broadcast %cst_32 : f32 to vector<1x128xf32>
    %137 = arith.maximumf %135, %136 : vector<1x128xf32>
    %cst_33 = arith.constant 9.99999974E-6 : f32
    %138 = vector.broadcast %cst_33 : f32 to vector<1x128xf32>
    %139 = arith.addf %137, %138 : vector<1x128xf32>
    %140 = math.rsqrt %139 : vector<1x128xf32>
    %141 = vector.broadcast %131 : vector<1x128xf32> to vector<8x128xf32>
    %142 = arith.subf %123, %141 : vector<8x128xf32>
    %143 = vector.broadcast %140 : vector<1x128xf32> to vector<8x128xf32>
    %144 = arith.mulf %142, %143 : vector<8x128xf32>
    %145 = vector.extract_strided_slice %4 {offsets = [9, 0], sizes = [1, 128], strides = [1, 1]} : vector<16x128xf32> to vector<1x128xf32>
    %146 = vector.broadcast %145 : vector<1x128xf32> to vector<8x128xf32>
    %147 = arith.mulf %144, %146 : vector<8x128xf32>
    %148 = vector.extract_strided_slice %4 {offsets = [10, 0], sizes = [1, 128], strides = [1, 1]} : vector<16x128xf32> to vector<1x128xf32>
    %149 = vector.broadcast %148 : vector<1x128xf32> to vector<8x128xf32>
    %150 = arith.addf %147, %149 : vector<8x128xf32>
    %cst_34 = arith.constant 0.000000e+00 : f32
    %151 = vector.broadcast %cst_34 : f32 to vector<8x128xf32>
    %152 = arith.cmpf ogt, %150, %151 : vector<8x128xf32>
    %cst_35 = arith.constant 1.000000e-01 : f32
    %153 = vector.broadcast %cst_35 : f32 to vector<8x128xf32>
    %154 = arith.mulf %153, %150 : vector<8x128xf32>
    %155 = arith.select %152, %150, %154 : vector<8x128xi1>, vector<8x128xf32>
    %c3 = arith.constant 3 : index
    %c0_36 = arith.constant 0 : index
    %c0_37 = arith.constant 0 : index
    %156 = vector.load %arg3[%c3, %c0_36, %c0_37] : memref<4x128x128xbf16, #tpu.memory_space<vmem>>, vector<1x128x128xbf16>
    %157 = vector.shape_cast %156 : vector<1x128x128xbf16> to vector<128x128xbf16>
    %158 = arith.truncf %155 : vector<8x128xf32> to vector<8x128xbf16>
    %cst_38 = arith.constant dense<0.000000e+00> : vector<8x128xf32>
    %159 = tpu.matmul %158, %157, %cst_38 {dimension_numbers = #tpu.dot_dimension_numbers<[1], [0], [0], [1], [0, 0, 1, 1], [], []>} : vector<8x128xbf16>, vector<128x128xbf16>, vector<8x128xf32> -> vector<8x128xf32>
    %160 = vector.extract_strided_slice %4 {offsets = [11, 0], sizes = [1, 128], strides = [1, 1]} : vector<16x128xf32> to vector<1x128xf32>
    %161 = vector.broadcast %160 : vector<1x128xf32> to vector<8x128xf32>
    %162 = arith.addf %159, %161 : vector<8x128xf32>
    %c0_39 = arith.constant 0 : index
    %c0_40 = arith.constant 0 : index
    %163 = vector.load %arg4[%c0_39, %c0_40] : memref<8x128xf32, #tpu.memory_space<vmem>>, vector<8x128xf32>
    tpu.vector_store %arg4[%c0_39, %c0_40], %162 {strides = array<i32>} : memref<8x128xf32, #tpu.memory_space<vmem>>, vector<8x128xf32>,
    return
  }
}

</mosaic_0001>

<bundles_post_ra>
// kernel: tpu_custom_call.1
= control target key start
LH: loop header
LB: loop body
LE: loop exit
PB: predicated region body
PF: predicated region fallthrough
CT: control target
= control target key end

     0   :  { %10 = vsyncpa [#allocation4], 0  ;;  %s1061_s0 = inlined_call_operand.<no memory space> [shape: s32[1], index: 0, kind: input, shape index: {}]   ;;  %s1062_s1 = inlined_call_operand.hbm [shape: f32[8,16], index: 1, kind: input, shape index: {}]   ;;  %s1063_s2 = inlined_call_operand.hbm [shape: f32[16,128], index: 2, kind: input, shape index: {}]   ;;  %s1064_s3 = inlined_call_operand.hbm [shape: bf16[4,128,128], index: 3, kind: input, shape index: {}]   ;;  %s1065_s4 = inlined_call_operand.hbm [shape: f32[8,128], index: 4, kind: output, shape index: {}]  }
   0x1   :  { %11 = vsyncpa [#allocation7], 0 }
   0x2   :  { %12 = vsyncpa [#allocation5], 0  ;;  %s883_s15 = smov [#allocation6]   ;;  %s789_s19 = scalar_lea.hbm %s1063_s2, 256 }
   0x3   :  { %s30_s16 = sshll.u32 %s883_s15, 4  ;;  %p790_p0 = scmp.ne.s32.totalorder %s1063_s2, %s789_s19  ;;  %s31_s16 = int_to_ptr.vmem [resolvable:$true] %s30_s16 }
   0x4   :  { %p793_p1 = scmp.lt.u32.totalorder %s789_s19, %s1063_s2 }
   0x6   :  { %p795_p2 = pnand %p793_p1, %p790_p0 }
   0x8   :  { %798 = shalt.err (!%p795_p2)
}
   0x9   :  { %s799_s24 = scalar_lea.vmem %s31_s16, 256  ;;  %p804_p4 = scmp.lt.s32.totalorder %s31_s16, %s31_s16 }
   0xa   :  { %p800_p3 = scmp.ne.s32.totalorder %s31_s16, %s799_s24  ;;  %p805_p5 = scmp.lt.s32.totalorder %s799_s24, %s799_s24 }
   0xc   :  { %p806_p6 = por %p805_p5, %p804_p4 }
   0xe   :  { %p807_p7 = pnand %p806_p6, %p800_p3 }
  0x10   :  { %810 = shalt.err (!%p807_p7)
}
  0x11   :  { %s884_s25 = smov 128   ;;  %s885_s26 = smov 8  }
  0x12   :  { %36 = dma.hbm_to_vmem [thread:$0]  %s1063_s2, 256, %s31_s16, [#allocation7], %s884_s25, %s884_s25, %s885_s26  }
  0x13   :  { %s886_s29 = smov [#allocation3]   ;;  %s887_s5 = smov [#allocation8]  }
  0x14   :  { %s21_s30 = sshll.u32 %s886_s29, 4  ;;  %s42_s6 = sshll.u32 %s887_s5, 4  ;;  %s22_s30 = int_to_ptr.vmem [resolvable:$true] %s21_s30  ;;  %s43_s6 = int_to_ptr.vmem [resolvable:$true] %s42_s6 }
  0x15   :  { %s811_s9 = scalar_lea.hbm %s1062_s1, 128 }
  0x16   :  { %p812_p8 = scmp.ne.s32.totalorder %s1062_s1, %s811_s9  ;;  %p815_p9 = scmp.lt.u32.totalorder %s811_s9, %s1062_s1 }
  0x18   :  { %p817_p10 = pnand %p815_p9, %p812_p8 }
  0x1a   :  { %820 = shalt.err (!%p817_p10)
}
  0x1b   :  { %s821_s2 = scalar_lea.vmem %s22_s30, 128  ;;  %p826_p12 = scmp.lt.s32.totalorder %s22_s30, %s22_s30 }
  0x1c   :  { %p822_p11 = scmp.ne.s32.totalorder %s22_s30, %s821_s2  ;;  %p827_p13 = scmp.lt.s32.totalorder %s821_s2, %s821_s2 }
  0x1e   :  { %p828_p0 = por %p827_p13, %p826_p12 }
  0x20   :  { %p829_p1 = pnand %p828_p0, %p822_p11 }
  0x22   :  { %832 = shalt.err (!%p829_p1)
}
  0x23   :  { %24 = dma.hbm_to_vmem [thread:$0]  %s1062_s1, 128, %s22_s30, [#allocation4]  }
  0x24   :  { %s833_s18 = scalar_lea.hbm %s1064_s3, 4096 }
  0x25   :  { %p834_p2 = scmp.ne.s32.totalorder %s1064_s3, %s833_s18  ;;  %p837_p3 = scmp.lt.u32.totalorder %s833_s18, %s1064_s3 }
  0x27   :  { %p839_p4 = pnand %p837_p3, %p834_p2 }
  0x29   :  { %842 = shalt.err (!%p839_p4)
}
  0x2a   :  { %s843_s23 = scalar_lea.vmem %s43_s6, 4096  ;;  %p848_p6 = scmp.lt.s32.totalorder %s43_s6, %s43_s6 }
  0x2b   :  { %p844_p5 = scmp.ne.s32.totalorder %s43_s6, %s843_s23  ;;  %p849_p7 = scmp.lt.s32.totalorder %s843_s23, %s843_s23 }
  0x2d   :  { %p850_p8 = por %p849_p7, %p848_p6 }
  0x2f   :  { %p851_p9 = pnand %p850_p8, %p844_p5 }
  0x31   :  { %854 = shalt.err (!%p851_p9)
}
  0x32   :  { %s888_s1 = smov 64   ;;  %s889_s24 = smov 4  }
  0x33   :  { %48 = dma.hbm_to_vmem [thread:$0]  %s1064_s3, 4096, %s43_s6, [#allocation7], %s888_s1, %s888_s1, %s889_s24  }
  0x34   :  { %877 = dma.done.wait [#allocation4], 128  }
  0x35   :  { %878 = vsyncadd [#allocation4], 4294967168  ;;  %s60_s29 = scvt.s32.f32 %s1061_s0 }
  0x36   :  { %879 = dma.done.wait [#allocation7], 4352  }
  0x37   :  { %880 = vsyncadd [#allocation7], 4294962944  ;;  %v890_v0 = vmov 0.0   ;;  %vm891_vm0 = vmmov 0   ;;  %v61_v1 = vstv %s60_s29  ;;  %v754_v2 = vld [vmem:[#allocation8] sm:$0xff]   ;;  %v64_v4 = vld [vmem:[#allocation3] sm:$0xff]  ;;  %v67_v26 = vlaneseq }
  0x38   :  { %676 = vmatprep.subr.bf16.mxu0 %v890_v0  ;;  %678 = vmatprep.mubr.msk.bf16.mxu0 %vm891_vm0, %v890_v0  ;;  %779 = vrcp.f32 %v61_v1  ;;  %vm73_vm1 = vcmask 130048   ;;  %v81_v5 = vmul.f32 %v64_v4, %v64_v4  ;;  %v973_v30 = vld [vmem:[#allocation6] sm:$0xff]  ;;  %v755_v40 = vld [vmem:[#allocation8 + $0x40] sm:$0xff]   ;;  %v756_v41 = vld [vmem:[#allocation8 + $0x48] sm:$0xff]   ;;  %v69_v49 = vstv %s1061_s0  ;;  %s892_s0 = smov [#allocation9]  }
  0x39   :  { %682 = vmatprep.subr.bf16.mxu1 %v890_v0  ;;  %698 = vmatprep.mubr.msk.bf16.mxu1 %vm891_vm0, %v890_v0  ;;  %v74_v6 = vsel %vm73_vm1, %v64_v4, 0.0  ;;  %v970_v28 = vshrl.u32 %v67_v26, 7  ;;  %v757_v42 = vld [vmem:[#allocation8 + $0x50] sm:$0xff]   ;;  %v758_v43 = vld [vmem:[#allocation8 + $0x58] sm:$0xff]   ;;  %v759_v44 = vld [vmem:[#allocation8 + $0x60] sm:$0xff]   ;;  %s610_s6 = sshll.u32 %s892_s0, 4  ;;  %s611_s6 = int_to_ptr.vmem [resolvable:$true] %s610_s6 }
  0x3a   :  { %677 = vmatpush3.bf16.msra.mxu0 %v754_v2  ;;  %v82_v7 = vsel %vm73_vm1, %v81_v5, 0.0  ;;  %v75_v8 = vrot.slane %v74_v6, 4  ;;  %683 = vmatpush3.bf16.msra.mxu1 %v755_v40  ;;  %v760_v45 = vld [vmem:[#allocation8 + $0x68] sm:$0xff]   ;;  %v761_v46 = vld [vmem:[#allocation8 + $0x70] sm:$0xff]   ;;  %v762_v47 = vld [vmem:[#allocation8 + $0x78] sm:$0xff]   ;;  %s855_s7 = scalar_lea.vmem %s611_s6, 128  ;;  %p860_p11 = scmp.lt.s32.totalorder %s611_s6, %s611_s6 }
  0x3b   :  { %702 = vmatprep.subr.bf16.mxu0 %v890_v0  ;;  %v83_v9 = vrot.slane %v82_v7, 4  ;;  %v101_v29 = vsub.s32 0, %v970_v28  ;;  %v106_v31 = vsub.s32 1, %v970_v28  ;;  %684 = vmatprep.subr.bf16.mxu1 %v890_v0  ;;  %v114_v48 = vsub.s32 2, %v970_v28  ;;  %p856_p10 = scmp.ne.s32.totalorder %s611_s6, %s855_s7  ;;  %p861_p12 = scmp.lt.s32.totalorder %s855_s7, %s855_s7 }
  0x3c   :  { %v76_v10 = vadd.f32 %v75_v8, %v74_v6  ;;  %vm70_vm2 = vcmp.lt.s32.totalorder %v970_v28, %v69_v49 }
  0x3d   :  { %v84_v11 = vadd.f32 %v83_v9, %v82_v7  ;;  %v102_v33 = vrot.slane %v973_v30, %v101_v29  ;;  %v107_v36 = vrot.slane %v973_v30, %v106_v31  ;;  %v115_v50 = vrot.slane %v973_v30, %v114_v48  ;;  %p862_p13 = por %p861_p12, %p860_p11 }
  0x3e   :  { %v77_v12 = vrot.slane %v76_v10, 2  ;;  %685 = vmatpush3.bf16.msra.mxu1 %v756_v41  ;;  %v1002_v51 = vsel %vm70_vm2, 1.0, %v890_v0 }
  0x3f   :  { %v85_v13 = vrot.slane %v84_v11, 2  ;;  %686 = vmatprep.subr.bf16.mxu1 %v890_v0  ;;  %p863_p0 = pnand %p862_p13, %p856_p10 }
  0x40   :  { %v78_v14 = vadd.f32 %v77_v12, %v76_v10 }
  0x41   :  { %v86_v15 = vadd.f32 %v85_v13, %v84_v11 }
  0x42   :  { %v780_v3 = vpop.eup %779  ;;  %v79_v16 = vrot.slane %v78_v14, 1  ;;  %687 = vmatpush3.bf16.msra.mxu1 %v757_v42 }
  0x43   :  { %742 = vpush %v780_v3  ;;  %v87_v17 = vrot.slane %v86_v15, 1  ;;  %688 = vmatprep.subr.bf16.mxu1 %v890_v0 }
  0x44   :  { %v80_v18 = vadd.f32 %v79_v16, %v78_v14  ;;  %v190_v14 = vsub.s32 3, %v970_v28 }
  0x45   :  { %v88_v19 = vadd.f32 %v87_v17, %v86_v15  ;;  %v195_v15 = vsub.s32 4, %v970_v28 }
  0x46   :  { %689 = vmatpush3.bf16.msra.mxu1 %v758_v43  ;;  %v191_v17 = vrot.slane %v973_v30, %v190_v14 }
  0x47   :  { %690 = vmatprep.subr.bf16.mxu1 %v890_v0 }
  0x4a   :  { %691 = vmatpush3.bf16.msra.mxu1 %v759_v44 }
  0x4b   :  { %692 = vmatprep.subr.bf16.mxu1 %v890_v0 }
  0x4e   :  { %693 = vmatpush3.bf16.msra.mxu1 %v760_v45 }
  0x4f   :  { %694 = vmatprep.subr.bf16.mxu1 %v890_v0 }
  0x52   :  { %695 = vmatpush3.bf16.msra.mxu1 %v761_v46 }
  0x53   :  { %696 = vmatprep.subr.bf16.mxu1 %v890_v0 }
  0x56   :  { %697 = vmatpush3.bf16.msra.mxu1 %v762_v47 }
  0x57   :  { %722 = vmatprep.subr.bf16.mxu1 %v890_v0 }
  0x74   :  { %s743_s3 = spop %742 }
  0x75   :  { %v966_v20 = vstv %s743_s3 }
  0x76   :  { %v90_v21 = vmul.f32 %v966_v20, %v80_v18  ;;  %v91_v22 = vmul.f32 %v966_v20, %v88_v19 }
  0x78   :  { %v92_v23 = vmul.f32 %v90_v21, %v90_v21  ;;  %v95_v32 = vsub.f32 %v64_v4, %v90_v21  ;;  %v196_v21 = vrot.slane %v973_v30, %v195_v15 }
  0x7a   :  { %v93_v24 = vsub.f32 %v91_v22, %v92_v23 }
  0x7c   :  { %v94_v25 = vmax.f32 %v93_v24, 0.0 }
  0x7e   :  { %v96_v27 = vadd.f32 1e-05, %v94_v25 }
  0x80   :  { %781 = vrsqrt.f32 %v96_v27  ;;  %v763_v27 = vld [vmem:[#allocation8 + $0x80] sm:$0xff]  }
  0x8a   :  { %v782_v34 = vpop.eup %781 }
  0x8b   :  { %v98_v35 = vmul.f32 %v782_v34, %v95_v32  ;;  %v764_v32 = vld [vmem:[#allocation8 + $0x88] sm:$0xff]   ;;  %v766_v34 = vld [vmem:[#allocation8 + $0x98] sm:$0xff]  }
  0x8d   :  { %v103_v37 = vmul.f32 %v102_v33, %v98_v35  ;;  %v765_v33 = vld [vmem:[#allocation8 + $0x90] sm:$0xff]   ;;  %v767_v35 = vld [vmem:[#allocation8 + $0xa0] sm:$0xff]  }
  0x8f   :  { %v108_v38 = vadd.f32 %v107_v36, %v103_v37  ;;  %v768_v36 = vld [vmem:[#allocation8 + $0xa8] sm:$0xff]   ;;  %v769_v37 = vld [vmem:[#allocation8 + $0xb0] sm:$0xff]  }
  0x91   :  { %v111_v39 = vpack.c.bf16 %v108_v38, %v108_v38  ;;  %v770_v38 = vld [vmem:[#allocation8 + $0xb8] sm:$0xff]  }
  0x93   :  { %679 = vmatmul.mubr.msk.bf16.vlgmr.msra.gmra.mrb[0].mxu0 %vm73_vm1, %v111_v39  ;;  %v221_v39 = vsub.s32 5, %v970_v28 }
  0x94   :  { %718 = vmatprep.mubr.msk.bf16.mxu0 %vm891_vm0, %v890_v0  ;;  %703 = vmatpush3.bf16.msra.mxu0 %v763_v27 }
  0x95   :  { %704 = vmatprep.subr.bf16.mxu0 %v890_v0  ;;  %v222_v40 = vrot.slane %v973_v30, %v221_v39 }
  0x98   :  { %705 = vmatpush3.bf16.msra.mxu0 %v764_v32 }
  0x99   :  { %706 = vmatprep.subr.bf16.mxu0 %v890_v0 }
  0x9c   :  { %707 = vmatpush3.bf16.msra.mxu0 %v765_v33 }
  0x9d   :  { %708 = vmatprep.subr.bf16.mxu0 %v890_v0 }
  0xa0   :  { %709 = vmatpush3.bf16.msra.mxu0 %v766_v34 }
  0xa1   :  { %710 = vmatprep.subr.bf16.mxu0 %v890_v0 }
  0xa4   :  { %711 = vmatpush3.bf16.msra.mxu0 %v767_v35 }
  0xa5   :  { %712 = vmatprep.subr.bf16.mxu0 %v890_v0 }
  0xa8   :  { %713 = vmatpush3.bf16.msra.mxu0 %v768_v36 }
  0xa9   :  { %714 = vmatprep.subr.bf16.mxu0 %v890_v0 }
  0xac   :  { %715 = vmatpush3.bf16.msra.mxu0 %v769_v37 }
  0xad   :  { %716 = vmatprep.subr.bf16.mxu0 %v890_v0 }
  0xb0   :  { %717 = vmatpush3.bf16.msra.mxu0 %v770_v38 }
 0x166   :  { %v159_v52 = vpop.f32.mrb[0].mxu0 }
 0x167   :  { %v160_v53 = vadd.f32 %v159_v52, %v115_v50  ;;  %v680_v54 = vpop.f32.mrb[1].mxu0 }
 0x168   :  { %v162_v55 = vpop.f32.mrb[2].mxu0 }
 0x169   :  { %v165_v56 = vmul.f32 %v1002_v51, %v160_v53  ;;  %v681_v57 = vpop.f32.mrb[3].mxu0 }
 0x16b   :  { %v166_v58 = vrot.slane %v165_v56, 4  ;;  %v172_v59 = vmul.f32 %v165_v56, %v160_v53 }
 0x16d   :  { %v167_v60 = vadd.f32 %v166_v58, %v165_v56  ;;  %v173_v61 = vrot.slane %v172_v59, 4 }
 0x16f   :  { %v168_v62 = vrot.slane %v167_v60, 2  ;;  %v174_v63 = vadd.f32 %v173_v61, %v172_v59 }
 0x171   :  { %v169_v1 = vadd.f32 %v168_v62, %v167_v60  ;;  %v175_v2 = vrot.slane %v174_v63, 2 }
 0x173   :  { %v170_v3 = vrot.slane %v169_v1, 1  ;;  %v176_v4 = vadd.f32 %v175_v2, %v174_v63 }
 0x175   :  { %v171_v5 = vadd.f32 %v170_v3, %v169_v1  ;;  %v177_v6 = vrot.slane %v176_v4, 1 }
 0x177   :  { %v178_v7 = vadd.f32 %v177_v6, %v176_v4  ;;  %v179_v8 = vmul.f32 %v171_v5, %v966_v20  ;;  %v336_v5 = vsub.s32 6, %v970_v28  ;;  %v341_v6 = vsub.s32 7, %v970_v28 }
 0x179   :  { %v180_v9 = vmul.f32 %v178_v7, %v966_v20  ;;  %v181_v10 = vmul.f32 %v179_v8, %v179_v8  ;;  %v186_v16 = vsub.f32 %v160_v53, %v179_v8  ;;  %v337_v8 = vrot.slane %v973_v30, %v336_v5 }
 0x17b   :  { %v182_v11 = vsub.f32 %v180_v9, %v181_v10 }
 0x17d   :  { %v183_v12 = vmax.f32 %v182_v11, 0.0  ;;  %v342_v11 = vrot.slane %v973_v30, %v341_v6  ;;  %v774_v30 = vld [vmem:[#allocation8 + $0xd8] sm:$0xff]  }
 0x17f   :  { %v184_v13 = vadd.f32 1e-05, %v183_v12 }
 0x181   :  { %783 = vrsqrt.f32 %v184_v13 }
 0x18b   :  { %v784_v18 = vpop.eup %783 }
 0x18c   :  { %v187_v19 = vmul.f32 %v784_v18, %v186_v16  ;;  %v771_v18 = vld [vmem:[#allocation8 + $0xc0] sm:$0xff]  }
 0x18e   :  { %v192_v22 = vmul.f32 %v191_v17, %v187_v19  ;;  %v772_v19 = vld [vmem:[#allocation8 + $0xc8] sm:$0xff]  }
 0x190   :  { %v197_v23 = vadd.f32 %v196_v21, %v192_v22  ;;  %v773_v21 = vld [vmem:[#allocation8 + $0xd0] sm:$0xff]   ;;  %v775_v22 = vld [vmem:[#allocation8 + $0xe0] sm:$0xff]  }
 0x192   :  { %vm198_vm3 = vcmp.gt.f32.partialorder %v197_v23, 0.0  ;;  %v199_v24 = vmul.f32 0.1, %v197_v23 }
 0x194   :  { %v200_v25 = vsel %vm198_vm3, %v197_v23, %v199_v24  ;;  %v776_v23 = vld [vmem:[#allocation8 + $0xe8] sm:$0xff]   ;;  %v777_v24 = vld [vmem:[#allocation8 + $0xf0] sm:$0xff]  }
 0x195   :  { %v218_v26 = vpack.c.bf16 %v200_v25, %v200_v25  ;;  %v778_v25 = vld [vmem:[#allocation8 + $0xf8] sm:$0xff]  }
 0x197   :  { %699 = vmatmul.mubr.bf16.vlgmr.msra.gmra.mrb[0].mxu1 %v218_v26  ;;  %v66_v26 = vld [vmem:[#allocation6 + $0x8] sm:$0xff] }
 0x198   :  { %738 = vmatprep.mubr.msk.bf16.mxu1 %vm891_vm0, %v890_v0  ;;  %723 = vmatpush3.bf16.msra.mxu1 %v771_v18  ;;  %v368_v27 = vrot.slane %v66_v26, %v101_v29 }
 0x199   :  { %724 = vmatprep.subr.bf16.mxu1 %v890_v0 }
 0x19c   :  { %725 = vmatpush3.bf16.msra.mxu1 %v772_v19 }
 0x19d   :  { %726 = vmatprep.subr.bf16.mxu1 %v890_v0 }
 0x1a0   :  { %727 = vmatpush3.bf16.msra.mxu1 %v773_v21 }
 0x1a1   :  { %728 = vmatprep.subr.bf16.mxu1 %v890_v0 }
 0x1a4   :  { %729 = vmatpush3.bf16.msra.mxu1 %v774_v30 }
 0x1a5   :  { %730 = vmatprep.subr.bf16.mxu1 %v890_v0 }
 0x1a8   :  { %731 = vmatpush3.bf16.msra.mxu1 %v775_v22 }
 0x1a9   :  { %732 = vmatprep.subr.bf16.mxu1 %v890_v0 }
 0x1ac   :  { %733 = vmatpush3.bf16.msra.mxu1 %v776_v23 }
 0x1ad   :  { %734 = vmatprep.subr.bf16.mxu1 %v890_v0 }
 0x1b0   :  { %735 = vmatpush3.bf16.msra.mxu1 %v777_v24 }
 0x1b1   :  { %736 = vmatprep.subr.bf16.mxu1 %v890_v0 }
 0x1b4   :  { %737 = vmatpush3.bf16.msra.mxu1 %v778_v25 }
 0x26a   :  { %v305_v41 = vpop.f32.mrb[0].mxu1 }
 0x26b   :  { %v306_v42 = vadd.f32 %v305_v41, %v222_v40  ;;  %v700_v43 = vpop.f32.mrb[1].mxu1 }
 0x26c   :  { %v308_v44 = vpop.f32.mrb[2].mxu1 }
 0x26d   :  { %v311_v45 = vmul.f32 %v1002_v51, %v306_v42  ;;  %v701_v46 = vpop.f32.mrb[3].mxu1 }
 0x26f   :  { %v312_v47 = vrot.slane %v311_v45, 4  ;;  %v318_v49 = vmul.f32 %v311_v45, %v306_v42 }
 0x271   :  { %v313_v50 = vadd.f32 %v312_v47, %v311_v45  ;;  %v319_v52 = vrot.slane %v318_v49, 4 }
 0x273   :  { %v314_v53 = vrot.slane %v313_v50, 2  ;;  %v320_v54 = vadd.f32 %v319_v52, %v318_v49 }
 0x275   :  { %v315_v55 = vadd.f32 %v314_v53, %v313_v50  ;;  %v321_v56 = vrot.slane %v320_v54, 2 }
 0x277   :  { %v316_v57 = vrot.slane %v315_v55, 1  ;;  %v322_v58 = vadd.f32 %v321_v56, %v320_v54 }
 0x279   :  { %v317_v59 = vadd.f32 %v316_v57, %v315_v55  ;;  %v323_v60 = vrot.slane %v322_v58, 1  ;;  %v483_v57 = vrot.slane %v66_v26, %v106_v31 }
 0x27b   :  { %v324_v61 = vadd.f32 %v323_v60, %v322_v58  ;;  %v325_v62 = vmul.f32 %v317_v59, %v966_v20  ;;  %v488_v59 = vrot.slane %v66_v26, %v114_v48 }
 0x27d   :  { %v326_v63 = vmul.f32 %v324_v61, %v966_v20  ;;  %v327_v1 = vmul.f32 %v325_v62, %v325_v62  ;;  %v332_v7 = vsub.f32 %v306_v42, %v325_v62 }
 0x27f   :  { %v328_v2 = vsub.f32 %v326_v63, %v327_v1 }
 0x281   :  { %v329_v3 = vmax.f32 %v328_v2, 0.0  ;;  %v514_v2 = vrot.slane %v66_v26, %v190_v14 }
 0x283   :  { %v330_v4 = vadd.f32 1e-05, %v329_v3 }
 0x285   :  { %785 = vrsqrt.f32 %v330_v4 }
 0x28f   :  { %v786_v9 = vpop.eup %785 }
 0x290   :  { %v333_v10 = vmul.f32 %v786_v9, %v332_v7 }
 0x292   :  { %v338_v12 = vmul.f32 %v337_v8, %v333_v10 }
 0x294   :  { %v343_v13 = vadd.f32 %v342_v11, %v338_v12 }
 0x296   :  { %vm344_vm4 = vcmp.gt.f32.partialorder %v343_v13, 0.0  ;;  %v345_v15 = vmul.f32 0.1, %v343_v13 }
 0x298   :  { %v346_v16 = vsel %vm344_vm4, %v343_v13, %v345_v15 }
 0x299   :  { %v364_v17 = vpack.c.bf16 %v346_v16, %v346_v16 }
 0x29b   :  { %719 = vmatmul.mubr.bf16.vlgmr.msra.gmra.mrb[4].mxu0 %v364_v17 }
 0x36e   :  { %v451_v32 = vpop.f32.mrb[4].mxu0 }
 0x36f   :  { %v452_v33 = vadd.f32 %v451_v32, %v368_v27  ;;  %v720_v34 = vpop.f32.mrb[5].mxu0 }
 0x370   :  { %v454_v35 = vpop.f32.mrb[6].mxu0 }
 0x371   :  { %v457_v36 = vmul.f32 %v1002_v51, %v452_v33  ;;  %v721_v37 = vpop.f32.mrb[7].mxu0 }
 0x373   :  { %v458_v38 = vrot.slane %v457_v36, 4  ;;  %v464_v39 = vmul.f32 %v457_v36, %v452_v33 }
 0x375   :  { %v459_v40 = vadd.f32 %v458_v38, %v457_v36  ;;  %v465_v41 = vrot.slane %v464_v39, 4 }
 0x377   :  { %v460_v42 = vrot.slane %v459_v40, 2  ;;  %v466_v43 = vadd.f32 %v465_v41, %v464_v39 }
 0x379   :  { %v461_v44 = vadd.f32 %v460_v42, %v459_v40  ;;  %v467_v0 = vrot.slane %v466_v43, 2 }
 0x37b   :  { %v462_v45 = vrot.slane %v461_v44, 1  ;;  %v468_v46 = vadd.f32 %v467_v0, %v466_v43 }
 0x37d   :  { %v463_v47 = vadd.f32 %v462_v45, %v461_v44  ;;  %v469_v49 = vrot.slane %v468_v46, 1 }
 0x37f   :  { %v470_v29 = vadd.f32 %v469_v49, %v468_v46  ;;  %v471_v50 = vmul.f32 %v463_v47, %v966_v20 }
 0x381   :  { %v472_v52 = vmul.f32 %v470_v29, %v966_v20  ;;  %v473_v53 = vmul.f32 %v471_v50, %v471_v50  ;;  %v478_v56 = vsub.f32 %v452_v33, %v471_v50 }
 0x383   :  { %v474_v51 = vsub.f32 %v472_v52, %v473_v53 }
 0x385   :  { %v475_v54 = vmax.f32 %v474_v51, 0.0 }
 0x387   :  { %v476_v55 = vadd.f32 1e-05, %v475_v54 }
 0x389   :  { %787 = vrsqrt.f32 %v476_v55 }
 0x393   :  { %v788_v58 = vpop.eup %787 }
 0x394   :  { %v479_v60 = vmul.f32 %v788_v58, %v478_v56 }
 0x396   :  { %v484_v61 = vmul.f32 %v483_v57, %v479_v60 }
 0x398   :  { %v489_v62 = vadd.f32 %v488_v59, %v484_v61 }
 0x39a   :  { %vm490_vm5 = vcmp.gt.f32.partialorder %v489_v62, 0.0  ;;  %v491_v63 = vmul.f32 0.1, %v489_v62 }
 0x39c   :  { %v492_v1 = vsel %vm490_vm5, %v489_v62, %v491_v63 }
 0x39d   :  { %v510_v20 = vpack.c.bf16 %v492_v1, %v492_v1 }
 0x39f   :  { %739 = vmatmul.mubr.bf16.vlgmr.msra.gmra.mrb[4].mxu1 %v510_v20 }
 0x472   :  { %v597_v3 = vpop.f32.mrb[4].mxu1 }
 0x473   :  { %v598_v4 = vadd.f32 %v597_v3, %v514_v2  ;;  %v740_v31 = vpop.f32.mrb[5].mxu1 }
 0x474   :  { %v600_v5 = vpop.f32.mrb[6].mxu1 }
 0x475   :  { %603 = vst [vmem:[#allocation9] sm:$0xff] %v598_v4  ;;  %v741_v48 = vpop.f32.mrb[7].mxu1 }
 0x476   :  { %866 = shalt.err (!%p863_p0)
}
 0x477   :  { %s867_s10 = scalar_lea.hbm %s1065_s4, 128 }
 0x478   :  { %p868_p1 = scmp.ne.s32.totalorder %s1065_s4, %s867_s10  ;;  %p871_p2 = scmp.lt.u32.totalorder %s867_s10, %s1065_s4 }
 0x47a   :  { %p873_p3 = pnand %p871_p2, %p868_p1 }
 0x47c   :  { %876 = shalt.err (!%p873_p3)
}
 0x47d   :  { %613 = dma.vmem_to_hbm [thread:$0]  %s611_s6, 128, %s1065_s4, [#allocation5]  }
 0x47e   :  { %881 = dma.done.wait [#allocation5], 128  }
 0x47f   :  { %882 = vsyncadd [#allocation5], 4294967168 }
 0x480   :  { %617 = vsyncpa [#allocation4], 1 }
 0x481   :  { %618 = vsyncpa [#allocation7], 1 }
 0x482   :  { %619 = vsyncpa [#allocation5], 1 }

</bundles_post_ra>
